<compile_context>
chip_gen: v5e
topology: v5e:2x2
jax: 0.10.0
libtpu: 0.0.40
codegen_flags: <defaults>
</compile_context>

<pallas_src>
import jax
import jax.numpy as jnp
from jax.experimental import pallas as pl
from jax.experimental.pallas import tpu as pltpu


_LANE = 128
_FUSED_SLAB_MAX_BYTES = 8 * 1024 * 1024       # per-batch (C, L) slab budget
_STREAM_BLOCK_TARGET_BYTES = 4 * 1024 * 1024  # per-step streaming block target


def _sublane_quantum(dtype) -> int:
    """Sublane packing quantum: 8 for 4-byte, 16 for bf16/fp16, 32 for 1-byte."""
    return {4: 8, 2: 16, 1: 32}.get(jnp.dtype(dtype).itemsize, 8)


# --------------------- Path A: fused per-batch slab kernel ---------------------

def _cse_fused_kernel(u_ref, w1_ref, w2_ref, o_ref):
    # u_ref / o_ref: (C, L) slab for one batch, resident in VMEM.
    # Gate: mean over L (f32 accumulation) -> two tiny matvecs -> sigmoid.
    z = jnp.mean(u_ref[...], axis=-1, keepdims=True, dtype=jnp.float32)   # (C, 1)
    z = jnp.dot(w1_ref[...].astype(jnp.float32), z,
                preferred_element_type=jnp.float32)                       # (C//2, 1)
    z = jnp.dot(w2_ref[...].astype(jnp.float32), z,
                preferred_element_type=jnp.float32)                       # (C, 1)
    s = (1.0 / (1.0 + jnp.exp(-z))).astype(o_ref.dtype)                   # sigmoid, (C, 1)
    # Second VMEM read of the slab (cheap); HBM was touched only once.
    o_ref[...] = u_ref[...] * s


def _cse_fused(u, w1, w2):
    B, C, L = u.shape
    H = w1.shape[0]
    itemsize = jnp.dtype(u.dtype).itemsize
    w_bytes = int(w1.size + w2.size) * jnp.dtype(w1.dtype).itemsize
    cost = pl.CostEstimate(
        flops=2 * B * C * L + 4 * B * C * H,
        transcendentals=B * C,
        bytes_accessed=2 * B * C * L * itemsize + w_bytes,
    )
    return pl.pallas_call(
        _cse_fused_kernel,
        out_shape=jax.ShapeDtypeStruct((B, C, L), u.dtype),
        grid_spec=pltpu.PrefetchScalarGridSpec(
            num_scalar_prefetch=0,
            grid=(B,),
            in_specs=[
                pl.BlockSpec((pl.Squeezed(), C, L), lambda b: (b, 0, 0)),
                # Weights: constant index -> fetched once, resident across batches.
                pl.BlockSpec((H, C), lambda b: (0, 0)),
                pl.BlockSpec((C, H), lambda b: (0, 0)),
            ],
            out_specs=pl.BlockSpec((pl.Squeezed(), C, L), lambda b: (b, 0, 0)),
        ),
        compiler_params=pltpu.CompilerParams(
            dimension_semantics=("parallel",),
            vmem_limit_bytes=48 * 1024 * 1024,
        ),
        cost_estimate=cost,
    )(u, w1, w2)


# ------------------- Path B: streaming scale kernel (huge L) -------------------

def _cse_scale_kernel(u_ref, s_ref, o_ref):
    # 1 vld + 1 broadcast vmul + 1 vst per vreg — HBM stays the binding unit.
    o_ref[...] = u_ref[...] * s_ref[...]


def _cse_streaming(u, w1, w2, block_target_bytes=_STREAM_BLOCK_TARGET_BYTES):
    B, C, L = u.shape
    itemsize = jnp.dtype(u.dtype).itemsize
    q = _sublane_quantum(u.dtype)

    # Gate prepass (tiny) in XLA; dtype= fuses the upcast into the reduce.
    z = jnp.mean(u, axis=-1, dtype=jnp.float32)                 # (B, C)
    z = z @ w1.astype(jnp.float32).T                            # (B, C//2)
    z = z @ w2.astype(jnp.float32).T                            # (B, C)
    s3 = jax.nn.sigmoid(z).astype(u.dtype)[:, :, None]          # (B, C, 1)

    # C tile: full C when modest, else 256 (a multiple of every sublane quantum).
    c_cap = (256 // q) * q
    ct = C if C <= c_cap else c_cap
    # L tile: lane-dense multiple of 128 targeting ~block_target_bytes, or full L.
    lt_cap = max(_LANE, (block_target_bytes // (ct * itemsize)) // _LANE * _LANE)
    lt = L if L <= lt_cap else lt_cap
    grid = (B, pl.cdiv(C, ct), pl.cdiv(L, lt))   # partial edge blocks are masked

    cost = pl.CostEstimate(
        flops=B * C * L,
        transcendentals=0,
        bytes_accessed=(2 * B * C * L + B * C) * itemsize,
    )
    return pl.pallas_call(
        _cse_scale_kernel,
        out_shape=jax.ShapeDtypeStruct((B, C, L), u.dtype),
        grid_spec=pltpu.PrefetchScalarGridSpec(
            num_scalar_prefetch=0,
            grid=grid,
            in_specs=[
                pl.BlockSpec((pl.Squeezed(), ct, lt),
                             lambda b, ci, li: (b, ci, li)),
                # Gate: constant along L -> re-DMA'd only when (b, ci) changes.
                pl.BlockSpec((pl.Squeezed(), ct, 1),
                             lambda b, ci, li: (b, ci, 0)),
            ],
            out_specs=pl.BlockSpec((pl.Squeezed(), ct, lt),
                                   lambda b, ci, li: (b, ci, li)),
        ),
        compiler_params=pltpu.CompilerParams(
            dimension_semantics=("parallel", "parallel", "parallel"),
            vmem_limit_bytes=40 * 1024 * 1024,
        ),
        cost_estimate=cost,
    )(u, s3)


# --------------------------------- dispatcher ----------------------------------

@jax.jit
def cse_pallas(u, w1, w2):
    """u: (B, C, L); w1: (C//2, C) Conv_Squeeze; w2: (C, C//2) Conv_Excitation."""
    _, C, L = u.shape
    slab_bytes = C * L * jnp.dtype(u.dtype).itemsize
    if slab_bytes <= _FUSED_SLAB_MAX_BYTES:
        return _cse_fused(u, w1, w2)        # single HBM read + write of U
    return _cse_streaming(u, w1, w2)        # huge slabs: XLA gate + tiled scale


def cse_ref(u, w1, w2):
    z = jnp.mean(u, axis=-1, keepdims=True)                 # (B, C, 1)
    z = jnp.einsum("oc,bcl->bol", w1, z)                    # (B, C//2, 1)
    z = jnp.einsum("oc,bcl->bol", w2, z)                    # (B, C, 1)
    return u * jax.nn.sigmoid(z)


if __name__ == "__main__":
    key = jax.random.PRNGKey(0)
    k_u, k_w1, k_w2, k_u2, k_u3 = jax.random.split(key, 5)

    # PEA_PCA-consistent small shape: hidden=64 -> cSE channels C=16, tokens L=64.
    B, C, L = 2, 16, 64
    U = jax.random.normal(k_u, (B, C, L), dtype=jnp.float32)
    W1 = jax.random.normal(k_w1, (C // 2, C), dtype=jnp.float32) * 0.1   # Conv_Squeeze
    W2 = jax.random.normal(k_w2, (C, C // 2), dtype=jnp.float32) * 0.1   # Conv_Excitation

    out = jax.block_until_ready(cse_pallas(U, W1, W2))
    ref = cse_ref(U, W1, W2)
    assert out.shape == U.shape and out.dtype == U.dtype
    assert jnp.allclose(out, ref, atol=1e-5, rtol=1e-5), "fused (small) mismatch"

    # Larger lane-dense case, still on the fused single-pass path.
    B2, C2, L2 = 2, 16, 2048
    U2 = jax.random.normal(k_u2, (B2, C2, L2), dtype=jnp.float32)
    out2 = jax.block_until_ready(cse_pallas(U2, W1, W2))
    ref2 = cse_ref(U2, W1, W2)
    assert jnp.allclose(out2, ref2, atol=1e-5, rtol=1e-5), "fused (lane-dense) mismatch"

    # Exercise the streaming fallback directly with a small forced block size so
    # the multi-step, partial-edge-block path is covered without huge test data.
    B3, C3, L3 = 2, 16, 4160   # not a multiple of the L tile -> masked edge block
    U3 = jax.random.normal(k_u3, (B3, C3, L3), dtype=jnp.float32)
    out3 = jax.block_until_ready(_cse_streaming(U3, W1, W2,
                                                block_target_bytes=64 * 1024))
    ref3 = cse_ref(U3, W1, W2)
    assert jnp.allclose(out3, ref3, atol=1e-5, rtol=1e-5), "streaming mismatch"

    print("KERNEL_OK")
</pallas_src>

<mosaic_0001>
module attributes {stable_mosaic.version = 11 : i64} {
  func.func @_cse_fused_kernel(%arg0: i32, %arg1: memref<1x16x64xf32, #tpu.memory_space<vmem>>, %arg2: memref<8x16xf32, #tpu.memory_space<vmem>>, %arg3: memref<16x8xf32, #tpu.memory_space<vmem>>, %arg4: memref<1x16x64xf32, #tpu.memory_space<vmem>>) attributes {dimension_semantics = [#tpu.dimension_semantics<parallel>], iteration_bounds = array<i64: 2>, scalar_prefetch = 0 : i64, scratch_operands = 0 : i64, tpu.core_type = #tpu.core_type<tc>, window_params = [{transform_indices = @transform_0, window_bounds = array<i64: 1, 16, 64>}, {pipeline_mode = #tpu.pipeline_mode<synchronous>, transform_indices = @transform_1, window_bounds = array<i64: 8, 16>}, {pipeline_mode = #tpu.pipeline_mode<synchronous>, transform_indices = @transform_2, window_bounds = array<i64: 16, 8>}, {transform_indices = @transform_3, window_bounds = array<i64: 1, 16, 64>}]} {
    %c0 = arith.constant 0 : index
    %c0_0 = arith.constant 0 : index
    %c0_1 = arith.constant 0 : index
    %0 = vector.load %arg1[%c0, %c0_0, %c0_1] : memref<1x16x64xf32, #tpu.memory_space<vmem>>, vector<1x16x64xf32>
    %1 = vector.shape_cast %0 : vector<1x16x64xf32> to vector<16x64xf32>
    %cst = arith.constant dense<0.000000e+00> : vector<16xf32>
    %2 = vector.multi_reduction <add>, %1, %cst [1] : vector<16x64xf32> to vector<16xf32>
    %3 = vector.shape_cast %2 : vector<16xf32> to vector<16x1xf32>
    %cst_2 = arith.constant 6.400000e+01 : f32
    %4 = vector.broadcast %cst_2 : f32 to vector<16x1xf32>
    %5 = arith.divf %3, %4 : vector<16x1xf32>
    %c0_3 = arith.constant 0 : index
    %c0_4 = arith.constant 0 : index
    %6 = vector.load %arg2[%c0_3, %c0_4] : memref<8x16xf32, #tpu.memory_space<vmem>>, vector<8x16xf32>
    %cst_5 = arith.constant dense<0.000000e+00> : vector<8x1xf32>
    %7 = tpu.matmul %6, %5, %cst_5 {dimension_numbers = #tpu.dot_dimension_numbers<[1], [0], [0], [1], [0, 0, 1, 1], [], []>} : vector<8x16xf32>, vector<16x1xf32>, vector<8x1xf32> -> vector<8x1xf32>
    %c0_6 = arith.constant 0 : index
    %c0_7 = arith.constant 0 : index
    %8 = vector.load %arg3[%c0_6, %c0_7] : memref<16x8xf32, #tpu.memory_space<vmem>>, vector<16x8xf32>
    %cst_8 = arith.constant dense<0.000000e+00> : vector<16x1xf32>
    %9 = tpu.matmul %8, %7, %cst_8 {dimension_numbers = #tpu.dot_dimension_numbers<[1], [0], [0], [1], [0, 0, 1, 1], [], []>} : vector<16x8xf32>, vector<8x1xf32>, vector<16x1xf32> -> vector<16x1xf32>
    %cst_9 = arith.constant 0.000000e+00 : f32
    %10 = vector.broadcast %cst_9 : f32 to vector<16x1xf32>
    %11 = arith.subf %10, %9 : vector<16x1xf32>
    %12 = math.exp %11 : vector<16x1xf32>
    %cst_10 = arith.constant 1.000000e+00 : f32
    %13 = vector.broadcast %cst_10 : f32 to vector<16x1xf32>
    %14 = arith.addf %13, %12 : vector<16x1xf32>
    %cst_11 = arith.constant 1.000000e+00 : f32
    %15 = vector.broadcast %cst_11 : f32 to vector<16x1xf32>
    %16 = arith.divf %15, %14 : vector<16x1xf32>
    %c0_12 = arith.constant 0 : index
    %c0_13 = arith.constant 0 : index
    %c0_14 = arith.constant 0 : index
    %17 = vector.load %arg1[%c0_12, %c0_13, %c0_14] : memref<1x16x64xf32, #tpu.memory_space<vmem>>, vector<1x16x64xf32>
    %18 = vector.shape_cast %17 : vector<1x16x64xf32> to vector<16x64xf32>
    %19 = vector.broadcast %16 : vector<16x1xf32> to vector<16x64xf32>
    %20 = arith.mulf %18, %19 : vector<16x64xf32>
    %c0_15 = arith.constant 0 : index
    %c0_16 = arith.constant 0 : index
    %c0_17 = arith.constant 0 : index
    %21 = vector.load %arg4[%c0_15, %c0_16, %c0_17] : memref<1x16x64xf32, #tpu.memory_space<vmem>>, vector<1x16x64xf32>
    %22 = vector.shape_cast %21 : vector<1x16x64xf32> to vector<16x64xf32>
    %23 = vector.shape_cast %20 : vector<16x64xf32> to vector<1x16x64xf32>
    tpu.vector_store %arg4[%c0_15, %c0_16, %c0_17], %23 {strides = array<i32>} : memref<1x16x64xf32, #tpu.memory_space<vmem>>, vector<1x16x64xf32>,
    return
  }
  func.func @transform_0(%arg0: i32) -> (i32, i32, i32) {
    %c0_i32 = arith.constant 0 : i32
    %c0_i32_0 = arith.constant 0 : i32
    %c0_i32_1 = arith.constant 0 : i32
    return %arg0, %c0_i32, %c0_i32_0 : i32, i32, i32
  }
  func.func @transform_1(%arg0: i32) -> (i32, i32) {
    %c0_i32 = arith.constant 0 : i32
    %c0_i32_0 = arith.constant 0 : i32
    %c0_i32_1 = arith.constant 0 : i32
    return %c0_i32, %c0_i32_0 : i32, i32
  }
  func.func @transform_2(%arg0: i32) -> (i32, i32) {
    %c0_i32 = arith.constant 0 : i32
    %c0_i32_0 = arith.constant 0 : i32
    %c0_i32_1 = arith.constant 0 : i32
    return %c0_i32, %c0_i32_0 : i32, i32
  }
  func.func @transform_3(%arg0: i32) -> (i32, i32, i32) {
    %c0_i32 = arith.constant 0 : i32
    %c0_i32_0 = arith.constant 0 : i32
    %c0_i32_1 = arith.constant 0 : i32
    return %arg0, %c0_i32, %c0_i32_0 : i32, i32, i32
  }
}

</mosaic_0001>

<bundles_post_ra>
// kernel: cse_pallas.1
= control target key start
LH: loop header
LB: loop body
LE: loop exit
PB: predicated region body
PF: predicated region fallthrough
CT: control target
= control target key end

     0   :  { %8 = vsyncpa [#allocation3], 0  ;;  %s767_s0 = inlined_call_operand.hbm [shape: f32[2,16,64], index: 0, kind: input, shape index: {}]   ;;  %s768_s1 = inlined_call_operand.vmem [shape: f32[8,16], index: 1, kind: input, shape index: {}]   ;;  %s769_s2 = inlined_call_operand.vmem [shape: f32[16,8], index: 2, kind: input, shape index: {}]   ;;  %s770_s3 = inlined_call_operand.hbm [shape: f32[2,16,64], index: 3, kind: output, shape index: {}]  }
   0x1   :  { %10 = vsyncpa [#allocation3 + $0x1], 0 }
   0x2   :  { %11 = vsyncpa [#allocation4], 0 }
   0x3   :  { %13 = vsyncpa [#allocation4 + $0x1], 0  ;;  %s615_s12 = smov 0   ;;  %s617_s13 = smov 0  }
   0x4   :  { %s619_s14 = smov 0   ;;  %s621_s15 = smov 0  }
   0x5 LB: > { %s636_s16 = sadd.s32 4294967295, %s587_s15   ;;  %s407_s17 = sadd.s32 4294967294, %s587_s15   ;;  %s587_s15 = sphi %s621_s15, %s780_s15   ;;  %s583_s14 = sphi %s619_s14, %s779_s14   ;;  %s579_s13 = sphi %s617_s13, %s778_s13   ;;  %s575_s12 = sphi %s615_s12, %s777_s12  }
   0x6   : > { %s640_s18 = sadd.s32 1, %s587_s15   ;;  %s26_s19 = sadd.s32 1, %s583_s14 }
   0x7   : > { %s23_s20 = ssub.s32 %s587_s15, %s640_s18  ;;  %p33_p0 = scmp.ne.s32.totalorder %s583_s14, %s579_s13 }
   0x8   : > { %p24_p1 = scmp.eq.s32.totalorder %s23_s20, 0  ;;  %p34_p2 = scmp.eq.s32.totalorder %s587_s15, 0 }
   0x9   : > { %p39_p3 = scmp.ne.s32.totalorder %s579_s13, %s575_s12  ;;  %p40_p4 = scmp.eq.s32.totalorder %s636_s16, 0 }
   0xa   : > { %s652_s21 = scalar_select %p24_p1, %s583_s14, %s26_s19  }
   0xb   : > { %p654_p5 = por %p34_p2, %p33_p0  ;;  %p658_p6 = por %p40_p4, %p39_p3 }
   0xc   : > { %p105_p7 = scmp.eq.s32.totalorder %s636_s16, 1  ;;  %p111_p8 = scmp.eq.s32.totalorder %s407_s17, 1 }
   0xd   : > { %p439_p10 = scmp.lt.s32.totalorder %s587_s15, 2  ;;  %s137_s26 = sand.u32 1, %s583_s14  }
   0xe   : > { %p665_p11 = por %p105_p7, %p33_p0  ;;  %p669_p12 = por %p111_p8, %p39_p3 }
   0xf   : > { %s424_s27 = sshll.u32 %s587_s15, 4  ;;  %s410_s28 = sshll.u32 %s137_s26, 4 }
  0x10   : > { %s146_s4 = scalar_lea.hbm %s767_s0, %s424_s27  ;;  %s141_s6 = scalar_lea.vmem [#allocation2], %s410_s28 }
  0x11   : > { %s147_s5 = sshll.u32 %s146_s4, 4  ;;  %s149_s7 = sshll.u32 %s141_s6, 4  ;;  %s148_s5 = int_to_ptr.hbm [resolvable:$true] %s147_s5  ;;  %s150_s7 = int_to_ptr.vmem [resolvable:$true] %s149_s7 }
  0x12   : > { %p680_p13 = pnand %p439_p10, %p654_p5  ;;  %p413_p0 = scmp.ge.s32.totalorder %s587_s15, 1 }
  0x13   : > { %p157_p1 = scmp.lt.s32.totalorder %s587_s15, 3  ;;  %s138_s9 = scalar_lea.sflag [#allocation3], %s137_s26 }
  0x14   : > { %s491_s10 = sshra.s32 %s148_s5, 4  ;;  %p495_p3 = pneg %p680_p13  ;;  %s492_s10 = int_to_ptr.hbm [resolvable:$true] %s491_s10 }
  0x15   : > { %s493_s11 = scalar_lea.hbm %s492_s10, 16  ;;  %s498_s20 = scalar_lea.hbm %s767_s0, 32 }
  0x16   : > { %p494_p2 = scmp.ne.s32.totalorder %s492_s10, %s493_s11  ;;  %p499_p5 = scmp.lt.s32.totalorder %s492_s10, %s767_s0 }
  0x17   : > { %p500_p8 = scmp.lt.s32.totalorder %s498_s20, %s493_s11 }
  0x18   : > { %p496_p4 = pnand %p495_p3, %p494_p2 }
  0x19   : > { %p501_p10 = por %p500_p8, %p499_p5 }
  0x1a   : > { %p497_p7 = pneg %p496_p4 }
  0x1c   : > { %p502_p9 = pnand %p501_p10, %p497_p7 }
  0x1e   : > { %505 = shalt.err (!%p502_p9)
}
  0x1f   : > { %s589_s26 = smov 128   ;;  %s590_s28 = smov 8  }
  0x20   : > { %434 = dma.hbm_to_vmem [thread:$0]  (!%p680_p13), %s148_s5, 256, %s150_s7, %s138_s9, %s589_s26, %s589_s26, %s590_s28  }
  0x21   : > { %p158_p2 = pnand %p413_p0, %p157_p1 }
  0x22   : > { %s701_s29 = sand.u32 (!%p158_p2), 1, %s579_s13  }
  0x23   : > { %161 = sbr.rel (%p158_p2) target bundleno = 582 (0x246), region = 32  ;;  %s414_s30 = sshll.u32 (!%p158_p2), %s701_s29, 4 }
  0x24   : > { %s164_s4 = scalar_lea.sflag (!%p158_p2), [#allocation3], %s701_s29  ;;  %s167_s6 = scalar_lea.vmem (!%p158_p2), [#allocation2], %s414_s30 }
  0x28   : > { %566 = dma.done.wait (%p658_p6), %s164_s4, 256  }
  0x29   : > { %568 = vsyncadd (%p658_p6), %s164_s4, 4294967040  ;;  %vm193_vm0 = vcmask 523264   ;;  %v711_v0 = vld [vmem:[%s167_s6 + $0x8] sm:$0xff]  ;;  %v715_v2 = vld [vmem:[%s167_s6] sm:$0xff]  ;;  %v591_v4 = vmov 64.0   ;;  %vm210_vm2 = vcmask 130048  }
  0x2a   : > { %v197_v1 = vsel %vm193_vm0, %v711_v0, 0.0  ;;  %v194_v3 = vsel %vm193_vm0, %v715_v2, 0.0  ;;  %481 = vrcp.f32 %v591_v4  ;;  %v209_v15 = vld [vmem:[%s768_s1] sm:$0xff]  ;;  %vm236_vm3 = vcmask 64512   ;;  %v235_v17 = vld [vmem:[%s769_s2 + $0x8] sm:$0xff]  ;;  %s425_s11 = sshll.u32 %s636_s16, 4 }
  0x2b   : > { %198 = vadd.xlane.f32.xlu0 %v197_v1  ;;  %v234_v16 = vld [vmem:[%s769_s2] sm:$0xff]  ;;  %v592_v19 = vmov 0   ;;  %s330_s20 = scalar_lea.hbm %s770_s3, %s425_s11  ;;  %s190_s22 = scalar_lea.vmem [#allocation5], %s414_s30 }
  0x2c   : > { %479 = vset.pattern.permute.xlu1 %v592_v19  ;;  %480 = vset.pattern.permute.xlu0 %v592_v19  ;;  %s331_s27 = sshll.u32 %s190_s22, 4  ;;  %s333_s26 = sshll.u32 %s330_s20, 4  ;;  %s332_s27 = int_to_ptr.vmem [resolvable:$true] %s331_s27  ;;  %s334_s26 = int_to_ptr.hbm [resolvable:$true] %s333_s26 }
  0x2d   : > { %s319_s16 = scalar_lea.sflag [#allocation4], %s701_s29  ;;  %s535_s28 = sshra.s32 %s334_s26, 4  ;;  %s536_s28 = int_to_ptr.hbm [resolvable:$true] %s535_s28 }
  0x2e   : > { %s537_s4 = scalar_lea.hbm %s536_s28, 16  ;;  %s541_s23 = scalar_lea.hbm %s770_s3, 32 }
  0x2f   : > { %p538_p6 = scmp.ne.s32.totalorder %s536_s28, %s537_s4  ;;  %p542_p0 = scmp.lt.s32.totalorder %s536_s28, %s770_s3 }
  0x30   : > { %v482_v5 = vpop.eup %481  ;;  %p543_p1 = scmp.lt.s32.totalorder %s541_s23, %s537_s4 }
  0x31   : > { %v201_v6 = vmul.f32 64.0, %v482_v5  ;;  %vm205_vm1 = vweird.f32 %v482_v5  ;;  %p539_p9 = pnand %p538_p6, %p665_p11 }
  0x32   : > { %p544_p3 = por %p543_p1, %p542_p0 }
  0x33   : > { %195 = vadd.xlane.f32.xlu0 %v194_v3  ;;  %v202_v7 = vsub.f32 1.0, %v201_v6  ;;  %p540_p13 = pneg %p539_p9 }
  0x35   : > { %v203_v8 = vmul.f32 %v482_v5, %v202_v7  ;;  %p545_p4 = pnand %p544_p3, %p540_p13 }
  0x37   : > { %v204_v9 = vadd.f32 %v482_v5, %v203_v8 }
  0x39   : > { %v206_v10 = vsel %vm205_vm1, %v482_v5, %v204_v9 }
  0x9e   : > { %v199_v11 = vpop.xlane.xlu0 %198 }
  0x9f   : > { %v208_v12 = vmul.f32 %v206_v10, %v199_v11 }
  0xa1   : > { %228 = vmatpush.msra.mxu0 %v208_v12 }
  0xa6   : > { %v196_v13 = vpop.xlane.xlu0 %195 }
  0xa7   : > { %v207_v14 = vmul.f32 %v206_v10, %v196_v13 }
  0xa9   : > { %229 = vmatpush.msra.mxu0 %v207_v14 }
  0xaa   : > { %416 = vmatmul.msk.f32.vlgmr.msra.gmra.mxu0 %vm210_vm2, %v209_v15 }
 0x127   : > { %v231_v18 = vpop.f32.mrf.mxu0 }
 0x128   : > { %258 = vmatpush.msra.mxu1 %v231_v18  ;;  %426 = vmatpush.msra.mxu2 %v231_v18 }
 0x129   : > { %417 = vmatmul.msk.f32.vlgmr.msra.gmra.mxu1 %vm236_vm3, %v234_v16  ;;  %418 = vmatmul.msk.f32.vlgmr.msra.gmra.mxu2 %vm236_vm3, %v235_v17 }
 0x1a6   : > { %v260_v20 = vpop.f32.mrf.mxu1 }
 0x1a7   : > { %v266_v21 = vsub.f32 0.0, %v260_v20 }
 0x1a9   : > { %v268_v22 = vmul.f32 1.442695, %v266_v21 }
 0x1ab   : > { %483 = vpow2.f32 %v268_v22 }
 0x1ac   : > { %v263_v23 = vpop.f32.mrf.mxu2 }
 0x1ad   : > { %v267_v24 = vsub.f32 0.0, %v263_v23 }
 0x1af   : > { %v270_v25 = vmul.f32 1.442695, %v267_v24 }
 0x1b1   : > { %v484_v26 = vpop.eup %483  ;;  %485 = vpow2.f32 %v270_v25 }
 0x1b2   : > { %v272_v27 = vadd.f32 1.0, %v484_v26 }
 0x1b4   : > { %487 = vrcp.f32 %v272_v27  ;;  %v285_v33 = vand.u32 2147483648, %v272_v27  ;;  %v283_v35 = vand.u32 2147483647, %v272_v27  ;;  %vm279_vm5 = vweird.f32 %v272_v27 }
 0x1b6   : > { %v286_v39 = vor.u32 1.1754944e-38, %v285_v33  ;;  %vm284_vm7 = vcmp.eq.f32.partialorder %v283_v35, 8.507059e+37 }
 0x1b7   : > { %v486_v28 = vpop.eup %485 }
 0x1b8   : > { %v273_v29 = vadd.f32 1.0, %v486_v28 }
 0x1ba   : > { %v488_v30 = vpop.eup %487  ;;  %489 = vrcp.f32 %v273_v29  ;;  %v300_v44 = vand.u32 2147483648, %v273_v29  ;;  %vm294_vm9 = vweird.f32 %v273_v29  ;;  %v298_v46 = vand.u32 2147483647, %v273_v29 }
 0x1bb   : > { %v275_v31 = vmul.f32 %v488_v30, %v272_v27  ;;  %vm280_vm4 = vweird.f32 %v488_v30 }
 0x1bc   : > { %vm281_vm6 = vmor %vm279_vm5, %vm280_vm4  ;;  %v301_v48 = vor.u32 1.1754944e-38, %v300_v44  ;;  %vm299_vm11 = vcmp.eq.f32.partialorder %v298_v46, 8.507059e+37 }
 0x1bd   : > { %v276_v32 = vsub.f32 1.0, %v275_v31 }
 0x1bf   : > { %v277_v34 = vmul.f32 %v488_v30, %v276_v32 }
 0x1c0   : > { %v490_v36 = vpop.eup %489 }
 0x1c1   : > { %v278_v37 = vadd.f32 %v488_v30, %v277_v34  ;;  %v290_v38 = vmul.f32 %v490_v36, %v273_v29  ;;  %vm295_vm8 = vweird.f32 %v490_v36 }
 0x1c2   : > { %vm296_vm10 = vmor %vm294_vm9, %vm295_vm8 }
 0x1c3   : > { %v282_v40 = vsel %vm281_vm6, %v488_v30, %v278_v37  ;;  %v291_v41 = vsub.f32 1.0, %v290_v38 }
 0x1c4   : > { %v287_v42 = vsel %vm284_vm7, %v286_v39, %v282_v40 }
 0x1c5   : > { %306 = vperm.xlu1 %479, %v287_v42   ;;  %v292_v43 = vmul.f32 %v490_v36, %v291_v41 }
 0x1c7   : > { %v293_v45 = vadd.f32 %v490_v36, %v292_v43 }
 0x1c9   : > { %v297_v47 = vsel %vm296_vm10, %v490_v36, %v293_v45 }
 0x1ca   : > { %v302_v49 = vsel %vm299_vm11, %v301_v48, %v297_v47 }
 0x1cd   : > { %311 = vperm.xlu1 %479, %v302_v49  }
 0x237   : > { %v307_v50 = vpop.permute.xlu1 %306 }
 0x238   : > { %v314_v51 = vmul.f32 %v307_v50, %v715_v2 }
 0x23a   : > { %316 = vst.msk [vmem:[%s190_s22] sm:$0xff] %vm193_vm0, %v314_v51 }
 0x23f   : > { %v312_v52 = vpop.permute.xlu1 %311 }
 0x240   : > { %v315_v53 = vmul.f32 %v312_v52, %v711_v0 }
 0x242   : > { %317 = vst.msk [vmem:[%s190_s22 + $0x8] sm:$0xff] %vm193_vm0, %v315_v53 }
 0x243   : > { %548 = shalt.err (!%p545_p4)
}
 0x244   : > { %s593_s29 = smov 128   ;;  %s594_s8 = smov 8  }
 0x245   : > { %429 = dma.vmem_to_hbm [thread:$0]  (%p665_p11), %s332_s27, 256, %s334_s26, %s319_s16, %s593_s29, %s593_s29, %s594_s8  }
 0x246 PF: > { %s348_s9 = sand.u32 1, %s575_s12   ;;  %p776_p7 = scmp.ge.s32.totalorder %s587_s15, 2 }
 0x247   : > { %s349_s10 = scalar_lea.sflag [#allocation4], %s348_s9 }
 0x248   : > { %p436_p5 = pnand %p776_p7, %p669_p12 }
 0x24a   : > { %p437_p8 = pneg %p436_p5 }
 0x24c   : > { %570 = dma.done.wait (%p437_p8), %s349_s10, 256  }
 0x24d   : > { %572 = vsyncadd (%p437_p8), %s349_s10, 4294967040  ;;  %p16_p10 = scmp.ge.s32.totalorder %s640_s18, 4   ;;  %s777_s12 = smov %s579_s13 }
 0x24e   : > { %s778_s13 = smov %s583_s14  ;;  %s779_s14 = smov %s652_s21 }
 0x24f   : > { %s780_s15 = smov %s640_s18  ;;  %18 = sbr.rel (!%p16_p10) target bundleno = 5 (0x5), region = 77 }
 0x254   :  { %355 = vsyncpa [#allocation3], 1 }
 0x255   :  { %357 = vsyncpa [#allocation3 + $0x1], 1 }
 0x256   :  { %358 = vsyncpa [#allocation4], 1 }
 0x257   :  { %360 = vsyncpa [#allocation4 + $0x1], 1 }

</bundles_post_ra>
